<compile_context>
chip_gen: v7x
topology: tpu7x:2x2x1
jax: 0.10.0
libtpu: 0.0.40
codegen_flags: <defaults>
</compile_context>

<pallas_src>
import jax
import jax.numpy as jnp
from jax.experimental import pallas as pl
from jax.experimental.pallas import tpu as pltpu

LANE = 128            # vreg lane width
SUB = 8               # vreg sublane count (f32)
MAX_TILE_ROWS = 8192  # 8192 x 128 x 4 B = 4 MiB per f32 input block


def _make_cbl_kernel(steps):
    """Streaming-reduction kernel over (tile_rows, 128) blocks.

    Per chunk (grid axis 0) produces three (8, 128) partial-sum slabs:
      sum(t), sum(l*t), sum(l)
    """

    def kernel(e_ref, x_ref, t_out, lt_out, l_out, acc_t, acc_lt, acc_l):
        j = pl.program_id(1)  # streaming / reduction axis ("arbitrary")

        @pl.when(j == 0)
        def _init():
            acc_t[...] = jnp.zeros_like(acc_t)
            acc_lt[...] = jnp.zeros_like(acc_lt)
            acc_l[...] = jnp.zeros_like(acc_l)

        # Stream native dtype from HBM; cast to f32 on the VPU (free under the
        # HBM-bound regime, and halves HBM traffic for bf16 inputs).
        e = e_ref[...].astype(jnp.float32)
        x = x_ref[...].astype(jnp.float32)

        # sigmoid(e) > 0.5  <=>  e > 0
        t = (e > 0.0).astype(jnp.float32)
        # Stable binary_cross_entropy_with_logits element.
        l = jnp.maximum(x, 0.0) - x * t + jnp.log1p(jnp.exp(-jnp.abs(x)))

        # Fold (tile_rows, 128) -> (8, 128): reshape keeps (8,128) tiles intact
        # (layout-preserving), the reduction is pure VALU vreg adds.
        acc_t[...] += t.reshape(-1, SUB, LANE).sum(axis=0)
        acc_lt[...] += (l * t).reshape(-1, SUB, LANE).sum(axis=0)
        acc_l[...] += l.reshape(-1, SUB, LANE).sum(axis=0)

        @pl.when(j == steps - 1)
        def _finalize():
            t_out[...] = acc_t[...].reshape(1, SUB, LANE)
            lt_out[...] = acc_lt[...].reshape(1, SUB, LANE)
            l_out[...] = acc_l[...].reshape(1, SUB, LANE)

    return kernel


def _partial_sums_jax(e, x):
    """Plain-JAX partial sums for the (tiny) unaligned tail."""
    e = e.astype(jnp.float32)
    x = x.astype(jnp.float32)
    t = (e > 0.0).astype(jnp.float32)
    l = jnp.maximum(x, 0.0) - x * t + jnp.log1p(jnp.exp(-jnp.abs(x)))
    return jnp.sum(t), jnp.sum(l * t), jnp.sum(l)


def cbl_loss(edges, labels, *, max_tile_rows=MAX_TILE_ROWS):
    """edges, labels: same-shape NCHW float arrays. Returns scalar loss (f32)."""
    assert edges.shape == labels.shape
    n = edges.size
    e_flat = edges.reshape(-1)   # free reshape, native dtype kept
    x_flat = labels.reshape(-1)

    # Sublane alignment for the native dtype (f32 -> 8, bf16/f16 -> 16, 8-bit -> 32).
    itemsize = min(edges.dtype.itemsize, labels.dtype.itemsize)
    row_align = max(SUB, 32 // max(1, itemsize))

    rows_total = n // LANE
    blocks_avail = rows_total // row_align  # aligned row-groups fully covered by real data

    if blocks_avail == 0:
        # Input too small for even one aligned block: do everything in plain JAX.
        fg, s1, sum_l = _partial_sums_jax(e_flat, x_flat)
    else:
        groups_cap = max(1, max_tile_rows // row_align)
        total_blocks = -(-blocks_avail // groups_cap)          # ceil
        nchunk = 2 if total_blocks >= 2 else 1                 # v7x megacore split
        if nchunk == 2:
            total_blocks += total_blocks % 2                   # unconditional even split
            total_blocks = min(total_blocks, (blocks_avail // 2) * 2)
        tile_rows = (blocks_avail // total_blocks) * row_align
        steps = total_blocks // nchunk
        bulk_rows = total_blocks * tile_rows
        bulk_elems = bulk_rows * LANE

        if bulk_elems == n:
            e2 = e_flat.reshape(bulk_rows, LANE)               # free view, no copy
            x2 = x_flat.reshape(bulk_rows, LANE)
        else:
            # TODO(synk): the prefix slice may materialize one copy of the bulk when
            # n is not an exact multiple of the block size; a fully copy-free ragged
            # path would need manual DMA (memory_space=pl.ANY + make_async_copy).
            e2 = jax.lax.slice(e_flat, (0,), (bulk_elems,)).reshape(bulk_rows, LANE)
            x2 = jax.lax.slice(x_flat, (0,), (bulk_elems,)).reshape(bulk_rows, LANE)

        kernel = _make_cbl_kernel(steps)
        in_spec = pl.BlockSpec((tile_rows, LANE), lambda c, j: (c * steps + j, 0))
        out_spec = pl.BlockSpec((1, SUB, LANE), lambda c, j: (c, 0, 0))
        out_sds = jax.ShapeDtypeStruct((nchunk, SUB, LANE), jnp.float32)

        part_t, part_lt, part_l = pl.pallas_call(
            kernel,
            out_shape=(out_sds, out_sds, out_sds),
            grid_spec=pltpu.PrefetchScalarGridSpec(
                num_scalar_prefetch=0,
                grid=(nchunk, steps),
                in_specs=[in_spec, in_spec],
                out_specs=(out_spec, out_spec, out_spec),
                scratch_shapes=[pltpu.VMEM((SUB, LANE), jnp.float32)] * 3,
            ),
            compiler_params=pltpu.CompilerParams(
                # Outer chunk axis sharded across TensorCores on v7x; inner axis
                # is the sequential streaming reduction.
                dimension_semantics=("parallel", "arbitrary"),
                # 2 inputs x 2 buffers x <=4 MiB + 12 KiB scratch <= 16.1 MiB:
                # safe on all generations (v7x physical VMEM is 64 MiB).
                # TODO(synk): optionally sweep pipeline_mode=pl.Buffered(3) on the
                # input specs; headroom exists now that accumulators are 12 KiB.
                vmem_limit_bytes=32 * 1024 * 1024,
            ),
            cost_estimate=pl.CostEstimate(
                flops=10 * bulk_elems,
                transcendentals=2 * bulk_elems,
                bytes_accessed=(edges.dtype.itemsize + labels.dtype.itemsize) * bulk_elems
                + 3 * 4 * nchunk * SUB * LANE,
            ),
        )(e2, x2)

        fg = jnp.sum(part_t)
        s1 = jnp.sum(part_lt)
        sum_l = jnp.sum(part_l)

        if bulk_elems < n:
            # Unaligned tail (< tile_rows*128 + 127 elements): fold in with plain JAX.
            fg_t, s1_t, l_t = _partial_sums_jax(e_flat[bulk_elems:], x_flat[bulk_elems:])
            fg = fg + fg_t
            s1 = s1 + s1_t
            sum_l = sum_l + l_t

    # Scalar combine (plain JAX glue).
    s0 = sum_l - s1                   # BCE mass on target == 0 elements
    total = jnp.float32(n)
    w1 = (total - fg) / total         # weight where target == 1  (bg / N)
    w0 = fg / total * 1.1             # weight where target == 0  (fg / N * 1.1)
    return (w1 * s1 + w0 * s0) / total


def _reference_loss(edges, labels):
    """Pure-JAX reference of the PyTorch CBL forward."""
    e = edges.reshape(-1).astype(jnp.float32)
    x = labels.reshape(-1).astype(jnp.float32)
    t = (jax.nn.sigmoid(e) > 0.5).astype(jnp.float32)
    fg = jnp.sum(t)
    bg = jnp.sum(1.0 - t)
    w = jnp.where(t == 1.0, bg / (bg + fg), fg / (bg + fg) * 1.1)
    l = jnp.maximum(x, 0.0) - x * t + jnp.log1p(jnp.exp(-jnp.abs(x)))
    return jnp.mean(w * l)


if __name__ == "__main__":
    # The module's laplacian_kernel buffer is unused in CBL.forward(); kept for parity.
    laplacian_kernel = jnp.array(
        [-1, -1, -1, -1, 8, -1, -1, -1, -1], dtype=jnp.float32
    ).reshape(1, 1, 3, 3)
    # TODO(synk): laplacian_kernel is never used by CBL.forward, so no kernel is built for it.

    key = jax.random.PRNGKey(0)
    k1, k2, k3, k4 = jax.random.split(key, 4)

    # 1) Main path: single-block kernel, f32, lane-aligned.
    edges = jax.random.normal(k1, (2, 1, 32, 32), dtype=jnp.float32)   # edge logits
    labels = jax.random.normal(k2, (2, 1, 32, 32), dtype=jnp.float32)  # prediction logits
    loss = jax.block_until_ready(cbl_loss(edges, labels))
    ref = jax.block_until_ready(_reference_loss(edges, labels))
    assert jnp.allclose(loss, ref, rtol=3e-5, atol=1e-6), (loss, ref)

    # 2) Multi-step streaming reduction + 2-chunk megacore split (small tiles).
    e2 = jax.random.normal(k3, (2, 1, 64, 128), dtype=jnp.float32)
    l2 = jax.random.normal(k4, (2, 1, 64, 128), dtype=jnp.float32)
    loss2 = jax.block_until_ready(cbl_loss(e2, l2, max_tile_rows=16))
    ref2 = jax.block_until_ready(_reference_loss(e2, l2))
    assert jnp.allclose(loss2, ref2, rtol=3e-5, atol=1e-6), (loss2, ref2)

    # 3) Lane-misaligned input: kernel covers the aligned bulk, JAX folds in the tail.
    e3 = jax.random.normal(k1, (2, 1, 40, 33), dtype=jnp.float32)
    l3 = jax.random.normal(k2, (2, 1, 40, 33), dtype=jnp.float32)
    loss3 = jax.block_until_ready(cbl_loss(e3, l3, max_tile_rows=8))
    ref3 = jax.block_until_ready(_reference_loss(e3, l3))
    assert jnp.allclose(loss3, ref3, rtol=3e-5, atol=1e-6), (loss3, ref3)

    # 4) Native bf16 inputs: cast happens inside the kernel (half the HBM traffic).
    e4 = jax.random.normal(k3, (2, 1, 32, 32), dtype=jnp.bfloat16)
    l4 = jax.random.normal(k4, (2, 1, 32, 32), dtype=jnp.bfloat16)
    loss4 = jax.block_until_ready(cbl_loss(e4, l4))
    ref4 = jax.block_until_ready(_reference_loss(e4, l4))
    assert jnp.allclose(loss4, ref4, rtol=1e-4, atol=1e-6), (loss4, ref4)

    print("KERNEL_OK")
</pallas_src>

<mosaic_0001>
module attributes {stable_mosaic.version = 11 : i64} {
  func.func @kernel(%arg0: i32, %arg1: i32, %arg2: memref<16x128xf32, #tpu.memory_space<vmem>>, %arg3: memref<16x128xf32, #tpu.memory_space<vmem>>, %arg4: memref<1x8x128xf32, #tpu.memory_space<vmem>>, %arg5: memref<1x8x128xf32, #tpu.memory_space<vmem>>, %arg6: memref<1x8x128xf32, #tpu.memory_space<vmem>>, %arg7: memref<8x128xf32, #tpu.memory_space<vmem>>, %arg8: memref<8x128xf32, #tpu.memory_space<vmem>>, %arg9: memref<8x128xf32, #tpu.memory_space<vmem>>) attributes {dimension_semantics = [#tpu.dimension_semantics<parallel>, #tpu.dimension_semantics<arbitrary>], iteration_bounds = array<i64: 1, 1>, scalar_prefetch = 0 : i64, scratch_operands = 3 : i64, tpu.core_type = #tpu.core_type<tc>, window_params = [{transform_indices = @transform_0, window_bounds = array<i64: 16, 128>}, {transform_indices = @transform_1, window_bounds = array<i64: 16, 128>}, {transform_indices = @transform_2, window_bounds = array<i64: 1, 8, 128>}, {transform_indices = @transform_3, window_bounds = array<i64: 1, 8, 128>}, {transform_indices = @transform_4, window_bounds = array<i64: 1, 8, 128>}]} {
    %c0_i32 = arith.constant 0 : i32
    %0 = arith.cmpi eq, %arg1, %c0_i32 : i32
    %1 = arith.extui %0 : i1 to i32
    %c0_i32_0 = arith.constant 0 : i32
    %2 = arith.cmpi ne, %1, %c0_i32_0 : i32
    scf.if %2 {
      %cst_23 = arith.constant 0.000000e+00 : f32
      %38 = vector.broadcast %cst_23 : f32 to vector<8x128xf32>
      %c0_24 = arith.constant 0 : index
      %c0_25 = arith.constant 0 : index
      %39 = vector.load %arg7[%c0_24, %c0_25] : memref<8x128xf32, #tpu.memory_space<vmem>>, vector<8x128xf32>
      tpu.vector_store %arg7[%c0_24, %c0_25], %38 {strides = array<i32>} : memref<8x128xf32, #tpu.memory_space<vmem>>, vector<8x128xf32>,
      %cst_26 = arith.constant 0.000000e+00 : f32
      %40 = vector.broadcast %cst_26 : f32 to vector<8x128xf32>
      %c0_27 = arith.constant 0 : index
      %c0_28 = arith.constant 0 : index
      %41 = vector.load %arg8[%c0_27, %c0_28] : memref<8x128xf32, #tpu.memory_space<vmem>>, vector<8x128xf32>
      tpu.vector_store %arg8[%c0_27, %c0_28], %40 {strides = array<i32>} : memref<8x128xf32, #tpu.memory_space<vmem>>, vector<8x128xf32>,
      %cst_29 = arith.constant 0.000000e+00 : f32
      %42 = vector.broadcast %cst_29 : f32 to vector<8x128xf32>
      %c0_30 = arith.constant 0 : index
      %c0_31 = arith.constant 0 : index
      %43 = vector.load %arg9[%c0_30, %c0_31] : memref<8x128xf32, #tpu.memory_space<vmem>>, vector<8x128xf32>
      tpu.vector_store %arg9[%c0_30, %c0_31], %42 {strides = array<i32>} : memref<8x128xf32, #tpu.memory_space<vmem>>, vector<8x128xf32>,
    } else {
    }
    %c0 = arith.constant 0 : index
    %c0_1 = arith.constant 0 : index
    %3 = vector.load %arg2[%c0, %c0_1] : memref<16x128xf32, #tpu.memory_space<vmem>>, vector<16x128xf32>
    %c0_2 = arith.constant 0 : index
    %c0_3 = arith.constant 0 : index
    %4 = vector.load %arg3[%c0_2, %c0_3] : memref<16x128xf32, #tpu.memory_space<vmem>>, vector<16x128xf32>
    %cst = arith.constant 0.000000e+00 : f32
    %5 = vector.broadcast %cst : f32 to vector<16x128xf32>
    %6 = arith.cmpf ogt, %3, %5 : vector<16x128xf32>
    %7 = arith.extui %6 : vector<16x128xi1> to vector<16x128xi32>
    %8 = arith.sitofp %7 : vector<16x128xi32> to vector<16x128xf32>
    %cst_4 = arith.constant 0.000000e+00 : f32
    %9 = vector.broadcast %cst_4 : f32 to vector<16x128xf32>
    %10 = arith.maximumf %4, %9 : vector<16x128xf32>
    %11 = arith.mulf %4, %8 : vector<16x128xf32>
    %12 = arith.subf %10, %11 : vector<16x128xf32>
    %13 = math.absf %4 : vector<16x128xf32>
    %cst_5 = arith.constant 0.000000e+00 : f32
    %14 = vector.broadcast %cst_5 : f32 to vector<16x128xf32>
    %15 = arith.subf %14, %13 : vector<16x128xf32>
    %16 = math.exp %15 : vector<16x128xf32>
    %17 = math.log1p %16 : vector<16x128xf32>
    %18 = arith.addf %12, %17 : vector<16x128xf32>
    %c0_6 = arith.constant 0 : index
    %c0_7 = arith.constant 0 : index
    %19 = vector.load %arg7[%c0_6, %c0_7] : memref<8x128xf32, #tpu.memory_space<vmem>>, vector<8x128xf32>
    %20 = vector.shape_cast %8 : vector<16x128xf32> to vector<2x8x128xf32>
    %cst_8 = arith.constant dense<0.000000e+00> : vector<8x128xf32>
    %21 = vector.multi_reduction <add>, %20, %cst_8 [0] : vector<2x8x128xf32> to vector<8x128xf32>
    %22 = arith.addf %19, %21 : vector<8x128xf32>
    %c0_9 = arith.constant 0 : index
    %c0_10 = arith.constant 0 : index
    %23 = vector.load %arg7[%c0_9, %c0_10] : memref<8x128xf32, #tpu.memory_space<vmem>>, vector<8x128xf32>
    tpu.vector_store %arg7[%c0_9, %c0_10], %22 {strides = array<i32>} : memref<8x128xf32, #tpu.memory_space<vmem>>, vector<8x128xf32>,
    %c0_11 = arith.constant 0 : index
    %c0_12 = arith.constant 0 : index
    %24 = vector.load %arg8[%c0_11, %c0_12] : memref<8x128xf32, #tpu.memory_space<vmem>>, vector<8x128xf32>
    %25 = arith.mulf %18, %8 : vector<16x128xf32>
    %26 = vector.shape_cast %25 : vector<16x128xf32> to vector<2x8x128xf32>
    %cst_13 = arith.constant dense<0.000000e+00> : vector<8x128xf32>
    %27 = vector.multi_reduction <add>, %26, %cst_13 [0] : vector<2x8x128xf32> to vector<8x128xf32>
    %28 = arith.addf %24, %27 : vector<8x128xf32>
    %c0_14 = arith.constant 0 : index
    %c0_15 = arith.constant 0 : index
    %29 = vector.load %arg8[%c0_14, %c0_15] : memref<8x128xf32, #tpu.memory_space<vmem>>, vector<8x128xf32>
    tpu.vector_store %arg8[%c0_14, %c0_15], %28 {strides = array<i32>} : memref<8x128xf32, #tpu.memory_space<vmem>>, vector<8x128xf32>,
    %c0_16 = arith.constant 0 : index
    %c0_17 = arith.constant 0 : index
    %30 = vector.load %arg9[%c0_16, %c0_17] : memref<8x128xf32, #tpu.memory_space<vmem>>, vector<8x128xf32>
    %31 = vector.shape_cast %18 : vector<16x128xf32> to vector<2x8x128xf32>
    %cst_18 = arith.constant dense<0.000000e+00> : vector<8x128xf32>
    %32 = vector.multi_reduction <add>, %31, %cst_18 [0] : vector<2x8x128xf32> to vector<8x128xf32>
    %33 = arith.addf %30, %32 : vector<8x128xf32>
    %c0_19 = arith.constant 0 : index
    %c0_20 = arith.constant 0 : index
    %34 = vector.load %arg9[%c0_19, %c0_20] : memref<8x128xf32, #tpu.memory_space<vmem>>, vector<8x128xf32>
    tpu.vector_store %arg9[%c0_19, %c0_20], %33 {strides = array<i32>} : memref<8x128xf32, #tpu.memory_space<vmem>>, vector<8x128xf32>,
    %c0_i32_21 = arith.constant 0 : i32
    %35 = arith.cmpi eq, %arg1, %c0_i32_21 : i32
    %36 = arith.extui %35 : i1 to i32
    %c0_i32_22 = arith.constant 0 : i32
    %37 = arith.cmpi ne, %36, %c0_i32_22 : i32
    scf.if %37 {
      %c0_23 = arith.constant 0 : index
      %c0_24 = arith.constant 0 : index
      %38 = vector.load %arg7[%c0_23, %c0_24] : memref<8x128xf32, #tpu.memory_space<vmem>>, vector<8x128xf32>
      %39 = vector.shape_cast %38 : vector<8x128xf32> to vector<1x8x128xf32>
      %c0_25 = arith.constant 0 : index
      %c0_26 = arith.constant 0 : index
      %c0_27 = arith.constant 0 : index
      %40 = vector.load %arg4[%c0_25, %c0_26, %c0_27] : memref<1x8x128xf32, #tpu.memory_space<vmem>>, vector<1x8x128xf32>
      tpu.vector_store %arg4[%c0_25, %c0_26, %c0_27], %39 {strides = array<i32>} : memref<1x8x128xf32, #tpu.memory_space<vmem>>, vector<1x8x128xf32>,
      %c0_28 = arith.constant 0 : index
      %c0_29 = arith.constant 0 : index
      %41 = vector.load %arg8[%c0_28, %c0_29] : memref<8x128xf32, #tpu.memory_space<vmem>>, vector<8x128xf32>
      %42 = vector.shape_cast %41 : vector<8x128xf32> to vector<1x8x128xf32>
      %c0_30 = arith.constant 0 : index
      %c0_31 = arith.constant 0 : index
      %c0_32 = arith.constant 0 : index
      %43 = vector.load %arg5[%c0_30, %c0_31, %c0_32] : memref<1x8x128xf32, #tpu.memory_space<vmem>>, vector<1x8x128xf32>
      tpu.vector_store %arg5[%c0_30, %c0_31, %c0_32], %42 {strides = array<i32>} : memref<1x8x128xf32, #tpu.memory_space<vmem>>, vector<1x8x128xf32>,
      %c0_33 = arith.constant 0 : index
      %c0_34 = arith.constant 0 : index
      %44 = vector.load %arg9[%c0_33, %c0_34] : memref<8x128xf32, #tpu.memory_space<vmem>>, vector<8x128xf32>
      %45 = vector.shape_cast %44 : vector<8x128xf32> to vector<1x8x128xf32>
      %c0_35 = arith.constant 0 : index
      %c0_36 = arith.constant 0 : index
      %c0_37 = arith.constant 0 : index
      %46 = vector.load %arg6[%c0_35, %c0_36, %c0_37] : memref<1x8x128xf32, #tpu.memory_space<vmem>>, vector<1x8x128xf32>
      tpu.vector_store %arg6[%c0_35, %c0_36, %c0_37], %45 {strides = array<i32>} : memref<1x8x128xf32, #tpu.memory_space<vmem>>, vector<1x8x128xf32>,
    } else {
    }
    return
  }
  func.func @transform_0(%arg0: i32, %arg1: i32) -> (i32, i32) {
    %c1_i32 = arith.constant 1 : i32
    %0 = arith.muli %arg0, %c1_i32 : i32
    %1 = arith.addi %0, %arg1 : i32
    %c0_i32 = arith.constant 0 : i32
    %c0_i32_0 = arith.constant 0 : i32
    return %1, %c0_i32 : i32, i32
  }
  func.func @transform_1(%arg0: i32, %arg1: i32) -> (i32, i32) {
    %c1_i32 = arith.constant 1 : i32
    %0 = arith.muli %arg0, %c1_i32 : i32
    %1 = arith.addi %0, %arg1 : i32
    %c0_i32 = arith.constant 0 : i32
    %c0_i32_0 = arith.constant 0 : i32
    return %1, %c0_i32 : i32, i32
  }
  func.func @transform_2(%arg0: i32, %arg1: i32) -> (i32, i32, i32) {
    %c0_i32 = arith.constant 0 : i32
    %c0_i32_0 = arith.constant 0 : i32
    %c0_i32_1 = arith.constant 0 : i32
    return %arg0, %c0_i32, %c0_i32_0 : i32, i32, i32
  }
  func.func @transform_3(%arg0: i32, %arg1: i32) -> (i32, i32, i32) {
    %c0_i32 = arith.constant 0 : i32
    %c0_i32_0 = arith.constant 0 : i32
    %c0_i32_1 = arith.constant 0 : i32
    return %arg0, %c0_i32, %c0_i32_0 : i32, i32, i32
  }
  func.func @transform_4(%arg0: i32, %arg1: i32) -> (i32, i32, i32) {
    %c0_i32 = arith.constant 0 : i32
    %c0_i32_0 = arith.constant 0 : i32
    %c0_i32_1 = arith.constant 0 : i32
    return %arg0, %c0_i32, %c0_i32_0 : i32, i32, i32
  }
}

</mosaic_0001>

<bundles_post_ra>
// kernel: tpu_custom_call.1
= control target key start
LH: loop header
LB: loop body
LE: loop exit
PB: predicated region body
PF: predicated region fallthrough
CT: control target
= control target key end

     0   :  { %10 = vsyncpa [#allocation6], 0  ;;  %s402_s0 = inlined_call_operand.hbm [shape: f32[16,128], index: 0, kind: input, shape index: {}]   ;;  %s403_s1 = inlined_call_operand.hbm [shape: f32[16,128], index: 1, kind: input, shape index: {}]   ;;  %s404_s2 = inlined_call_operand.hbm [shape: f32[1,8,128], index: 2, kind: output, shape index: {0}]   ;;  %s405_s3 = inlined_call_operand.hbm [shape: f32[1,8,128], index: 3, kind: output, shape index: {1}]   ;;  %s406_s4 = inlined_call_operand.hbm [shape: f32[1,8,128], index: 4, kind: output, shape index: {2}]  }
   0x1   :  { %11 = vsyncpa [#allocation9], 0 }
   0x2   :  { %12 = vsyncpa [#allocation7], 0 }
   0x3   :  { %13 = vsyncpa [#allocation12], 0  ;;  %s309_s15 = smov [#allocation5]   ;;  %s191_s19 = scalar_lea.hbm %s402_s0, 256 }
   0x4   :  { %s23_s16 = sshll.u32 %s309_s15, 4  ;;  %p192_p0 = scmp.ne.s32.totalorder %s402_s0, %s191_s19  ;;  %s24_s16 = int_to_ptr.vmem [resolvable:$true] %s23_s16 }
   0x5   :  { %p195_p1 = scmp.lt.u32.totalorder %s191_s19, %s402_s0 }
   0x7   :  { %p197_p2 = pnand %p195_p1, %p192_p0 }
   0x9   :  { %200 = shalt.err (!%p197_p2)
}
   0xa   :  { %s201_s24 = scalar_lea.vmem %s24_s16, 256  ;;  %p206_p4 = scmp.lt.s32.totalorder %s24_s16, %s24_s16 }
   0xb   :  { %p202_p3 = scmp.ne.s32.totalorder %s24_s16, %s201_s24  ;;  %p207_p5 = scmp.lt.s32.totalorder %s201_s24, %s201_s24 }
   0xd   :  { %p208_p6 = por %p207_p5, %p206_p4 }
   0xf   :  { %p209_p7 = pnand %p208_p6, %p202_p3 }
  0x11   :  { %212 = shalt.err (!%p209_p7)
}
  0x12   :  { %s310_s25 = smov 128   ;;  %s311_s26 = smov 8  }
  0x13   :  { %29 = dma.hbm_to_vmem [thread:$0]  %s402_s0, 256, %s24_s16, [#allocation6], %s310_s25, %s310_s25, %s311_s26  }
  0x14   :  { %s312_s29 = smov [#allocation8]   ;;  %s213_s7 = scalar_lea.hbm %s403_s1, 256 }
  0x15   :  { %s39_s30 = sshll.u32 %s312_s29, 4  ;;  %p214_p8 = scmp.ne.s32.totalorder %s403_s1, %s213_s7  ;;  %s40_s30 = int_to_ptr.vmem [resolvable:$true] %s39_s30 }
  0x16   :  { %p217_p9 = scmp.lt.u32.totalorder %s213_s7, %s403_s1 }
  0x18   :  { %p219_p10 = pnand %p217_p9, %p214_p8 }
  0x1a   :  { %222 = shalt.err (!%p219_p10)
}
  0x1b   :  { %s223_s12 = scalar_lea.vmem %s40_s30, 256  ;;  %p228_p12 = scmp.lt.s32.totalorder %s40_s30, %s40_s30 }
  0x1c   :  { %p224_p11 = scmp.ne.s32.totalorder %s40_s30, %s223_s12  ;;  %p229_p13 = scmp.lt.s32.totalorder %s223_s12, %s223_s12 }
  0x1e   :  { %p230_p0 = por %p229_p13, %p228_p12 }
  0x20   :  { %p231_p1 = pnand %p230_p0, %p224_p11 }
  0x22   :  { %234 = shalt.err (!%p231_p1)
}
  0x23   :  { %45 = dma.hbm_to_vmem [thread:$0]  %s403_s1, 256, %s40_s30, [#allocation9], %s310_s25, %s310_s25, %s311_s26  }
  0x24   :  { %301 = dma.done.wait [#allocation6], 256  }
  0x25   :  { %302 = vsyncadd [#allocation6], 4294967040 }
  0x26   :  { %303 = dma.done.wait [#allocation9], 256  }
  0x27   :  { %304 = vsyncadd [#allocation9], 4294967040  ;;  %v63_v0 = vld [vmem:[#allocation5] sm:$0xff]  ;;  %v64_v1 = vld [vmem:[#allocation5 + $0x8] sm:$0xff]  ;;  %s313_s14 = smov [#allocation10]   ;;  %v314_v5 = vmov 0.0  }
  0x28   :  { %v65_v2 = vld [vmem:[#allocation8] sm:$0xff]  ;;  %s136_s15 = sshll.u32 %s313_s14, 4  ;;  %v66_v3 = vld [vmem:[#allocation8 + $0x8] sm:$0xff]  ;;  %vm67_vm0 = vcmp.gt.f32.partialorder %v63_v0, 0.0  ;;  %vm68_vm1 = vcmp.gt.f32.partialorder %v64_v1, 0.0  ;;  %s137_s15 = int_to_ptr.vmem [resolvable:$true] %s136_s15 }
  0x29   :  { %v79_v4 = vand.u32 2147483647, %v65_v2  ;;  %v173_v6 = vsel %vm67_vm0, 1.0, %v314_v5  ;;  %v174_v7 = vsel %vm68_vm1, 1.0, %v314_v5  ;;  %v80_v8 = vand.u32 2147483647, %v66_v3  ;;  %p240_p3 = scmp.lt.s32.totalorder %s137_s15, %s137_s15 }
  0x2a   :  { %v108_v10 = vadd.f32 %v174_v7, %v173_v6  ;;  %s235_s1 = scalar_lea.vmem %s137_s15, 128 }
  0x2b   :  { %v81_v9 = vsub.f32 0.0, %v79_v4  ;;  %v82_v11 = vsub.f32 0.0, %v80_v8  ;;  %p236_p2 = scmp.ne.s32.totalorder %s137_s15, %s235_s1  ;;  %p241_p4 = scmp.lt.s32.totalorder %s235_s1, %s235_s1 }
  0x2c   :  { %125 = vst [vmem:[#allocation10] sm:$0xff] %v108_v10 }
  0x2d   :  { %v83_v12 = vmul.f32 1.442695, %v81_v9  ;;  %v85_v13 = vmul.f32 1.442695, %v82_v11  ;;  %p242_p5 = por %p241_p4, %p240_p3 }
  0x2f   :  { %p243_p6 = pnand %p242_p5, %p236_p2 }
  0x31   :  { %246 = shalt.err (!%p243_p6)
}
  0x32   :  { %s247_s18 = scalar_lea.hbm %s404_s2, 128 }
  0x33   :  { %p248_p7 = scmp.ne.s32.totalorder %s404_s2, %s247_s18  ;;  %p251_p8 = scmp.lt.u32.totalorder %s247_s18, %s404_s2 }
  0x35   :  { %p253_p9 = pnand %p251_p8, %p248_p7 }
  0x37   :  { %256 = shalt.err (!%p253_p9)
}
  0x38   :  { %139 = dma.vmem_to_hbm [thread:$0]  %s137_s15, 128, %s404_s2, [#allocation7]   ;;  %183 = vpow2.f32 %v83_v12  ;;  %v73_v21 = vmax.f32 %v65_v2, 0.0  ;;  %v75_v22 = vmul.f32 %v173_v6, %v65_v2  ;;  %v74_v25 = vmax.f32 %v66_v3, 0.0 }
  0x39   :  { %185 = vpow2.f32 %v85_v13  ;;  %v76_v26 = vmul.f32 %v174_v7, %v66_v3  ;;  %s315_s2 = smov [#allocation11]   ;;  %s316_s26 = smov [#allocation13]  }
  0x3a   :  { %v77_v30 = vsub.f32 %v73_v21, %v75_v22  ;;  %s146_s25 = sshll.u32 %s315_s2, 4  ;;  %s156_s27 = sshll.u32 %s316_s26, 4  ;;  %s147_s25 = int_to_ptr.vmem [resolvable:$true] %s146_s25  ;;  %s157_s27 = int_to_ptr.vmem [resolvable:$true] %s156_s27 }
  0x3b   :  { %v78_v33 = vsub.f32 %v74_v25, %v76_v26  ;;  %s257_s28 = scalar_lea.vmem %s147_s25, 128  ;;  %p262_p11 = scmp.lt.s32.totalorder %s147_s25, %s147_s25 }
  0x3c   :  { %p258_p10 = scmp.ne.s32.totalorder %s147_s25, %s257_s28  ;;  %p263_p12 = scmp.lt.s32.totalorder %s257_s28, %s257_s28 }
  0x3e   :  { %p264_p13 = por %p263_p12, %p262_p11 }
  0x40   :  { %p265_p0 = pnand %p264_p13, %p258_p10 }
  0x42   :  { %v184_v14 = vpop.eup %183 }
  0x43   :  { %v186_v15 = vpop.eup %185  ;;  %v87_v16 = vadd.f32 1.0, %v184_v14  ;;  %v90_v18 = vmul.f32 -0.5, %v184_v14  ;;  %v93_v23 = vand.u32 2147483647, %v184_v14 }
  0x44   :  { %v96_v17 = vadd.f32 1.0, %v186_v15  ;;  %v99_v19 = vmul.f32 -0.5, %v186_v15  ;;  %v102_v27 = vand.u32 2147483647, %v186_v15 }
  0x45   :  { %187 = vlog2.f32 %v87_v16  ;;  %v91_v20 = vadd.f32 1.0, %v90_v18  ;;  %vm94_vm2 = vcmp.lt.f32.partialorder %v93_v23, 0.0004427343 }
  0x46   :  { %189 = vlog2.f32 %v96_v17  ;;  %v100_v24 = vadd.f32 1.0, %v99_v19  ;;  %vm103_vm3 = vcmp.lt.f32.partialorder %v102_v27, 0.0004427343 }
  0x47   :  { %v92_v28 = vmul.f32 %v184_v14, %v91_v20 }
  0x48   :  { %v101_v31 = vmul.f32 %v186_v15, %v100_v24 }
  0x4f   :  { %v188_v29 = vpop.eup %187 }
  0x50   :  { %v190_v32 = vpop.eup %189  ;;  %v89_v34 = vmul.f32 0.6931472, %v188_v29 }
  0x51   :  { %v98_v35 = vmul.f32 0.6931472, %v190_v32 }
  0x52   :  { %v95_v36 = vsel %vm94_vm2, %v92_v28, %v89_v34 }
  0x53   :  { %v104_v37 = vsel %vm103_vm3, %v101_v31, %v98_v35  ;;  %v105_v38 = vadd.f32 %v95_v36, %v77_v30 }
  0x54   :  { %v106_v39 = vadd.f32 %v104_v37, %v78_v33 }
  0x55   :  { %v112_v40 = vmul.f32 %v173_v6, %v105_v38 }
  0x56   :  { %v113_v41 = vmul.f32 %v174_v7, %v106_v39  ;;  %v118_v42 = vadd.f32 %v106_v39, %v105_v38 }
  0x58   :  { %v114_v43 = vadd.f32 %v113_v41, %v112_v40  ;;  %129 = vst [vmem:[#allocation13] sm:$0xff] %v118_v42 }
  0x5a   :  { %127 = vst [vmem:[#allocation11] sm:$0xff] %v114_v43 }
  0x5b   :  { %268 = shalt.err (!%p265_p0)
}
  0x5c   :  { %s269_s5 = scalar_lea.hbm %s405_s3, 128 }
  0x5d   :  { %p270_p1 = scmp.ne.s32.totalorder %s405_s3, %s269_s5  ;;  %p273_p2 = scmp.lt.u32.totalorder %s269_s5, %s405_s3 }
  0x5f   :  { %p275_p3 = pnand %p273_p2, %p270_p1 }
  0x61   :  { %278 = shalt.err (!%p275_p3)
}
  0x62   :  { %149 = dma.vmem_to_hbm [thread:$0]  %s147_s25, 128, %s405_s3, [#allocation12]  }
  0x63   :  { %s279_s12 = scalar_lea.vmem %s157_s27, 128  ;;  %p284_p5 = scmp.lt.s32.totalorder %s157_s27, %s157_s27 }
  0x64   :  { %p280_p4 = scmp.ne.s32.totalorder %s157_s27, %s279_s12  ;;  %p285_p6 = scmp.lt.s32.totalorder %s279_s12, %s279_s12 }
  0x66   :  { %p286_p7 = por %p285_p6, %p284_p5 }
  0x68   :  { %p287_p8 = pnand %p286_p7, %p280_p4 }
  0x6a   :  { %290 = shalt.err (!%p287_p8)
}
  0x6b   :  { %s291_s14 = scalar_lea.hbm %s406_s4, 128 }
  0x6c   :  { %p292_p9 = scmp.ne.s32.totalorder %s406_s4, %s291_s14  ;;  %p295_p10 = scmp.lt.u32.totalorder %s291_s14, %s406_s4 }
  0x6e   :  { %p297_p11 = pnand %p295_p10, %p292_p9 }
  0x70   :  { %300 = shalt.err (!%p297_p11)
}
  0x71   :  { %159 = dma.vmem_to_hbm [thread:$0]  %s157_s27, 128, %s406_s4, [#allocation12]  }
  0x72   :  { %305 = dma.done.wait [#allocation7], 128  }
  0x73   :  { %306 = vsyncadd [#allocation7], 4294967168 }
  0x74   :  { %307 = dma.done.wait [#allocation12], 256  }
  0x75   :  { %308 = vsyncadd [#allocation12], 4294967040 }
  0x76   :  { %169 = vsyncpa [#allocation6], 1 }
  0x77   :  { %170 = vsyncpa [#allocation9], 1 }
  0x78   :  { %171 = vsyncpa [#allocation7], 1 }
  0x79   :  { %172 = vsyncpa [#allocation12], 1 }

</bundles_post_ra>
